<compile_context>
chip_gen: v7x
topology: tpu7x:2x2x1
jax: 0.10.0
libtpu: 0.0.40
codegen_flags: <defaults>
</compile_context>

<pallas_src>
import jax
import jax.numpy as jnp
from jax.experimental import pallas as pl
from jax.experimental.pallas import tpu as pltpu


def _round_up(n: int, m: int) -> int:
    return ((n + m - 1) // m) * m


def _layer_scale_kernel(x_ref, gamma_ref, o_ref):
    # x_ref: (TM, Dp) tile; gamma_ref: (1, Dp) float32, broadcasts over rows.
    x = x_ref[...].astype(jnp.float32)
    o_ref[...] = (x * gamma_ref[...]).astype(o_ref.dtype)


def _block_and_vmem_limit():
    """Per-generation block-size target and scoped-VMEM limit (bytes)."""
    try:
        kind = jax.devices()[0].device_kind.lower()
    except Exception:
        kind = ""
    if "v6" in kind:                   # 128 MiB VMEM, ~1.4 TB/s HBM
        return 8 << 20, 64 << 20
    if "v5" in kind or "v4" in kind:   # 128 MiB VMEM, slower HBM
        return 4 << 20, 32 << 20
    # v7x (64 MiB VMEM per TC) and unknown chips: conservative but >> default.
    return 4 << 20, 48 << 20


def layer_scale(x, gamma, *, donate_x: bool = False):
    """out = x * gamma.  x: (..., D), gamma: (D,) -> same shape/dtype as x."""
    orig_shape = x.shape
    D = int(orig_shape[-1])
    assert gamma.shape == (D,), f"gamma must be ({D},), got {gamma.shape}"

    rows = 1
    for s in orig_shape[:-1]:
        rows *= int(s)
    rows = max(rows, 1)

    g = gamma.astype(jnp.float32)  # keep f32; multiply done in f32 in-kernel

    # --- lane-dense 2D view without any HBM pad/slice -----------------------
    if D % 128 == 0:
        x2 = x.reshape(rows, D)
        Dp = D
    elif 128 % D == 0 and (rows * D) % 128 == 0:
        # Fold rows into the lane axis; tile gamma to match.
        Dp = 128
        x2 = x.reshape((rows * D) // 128, 128)
        g = jnp.tile(g, 128 // D)
        rows = (rows * D) // 128
    else:
        # Odd D: full-D blocks (masked stores) instead of padding; avoids
        # extra full-tensor HBM read/write passes in the wrapper.
        x2 = x.reshape(rows, D)
        Dp = D
    g2 = g.reshape(1, Dp)

    itemsize = jnp.dtype(x.dtype).itemsize
    sublane = {4: 8, 2: 16, 1: 32}.get(itemsize, 8)
    block_bytes, vmem_limit = _block_and_vmem_limit()

    if rows <= sublane:
        tm = rows  # single full-extent block (block == full array dim)
    else:
        tm = max(sublane, (block_bytes // (Dp * itemsize)) // sublane * sublane)
        tm = min(tm, _round_up(rows, sublane))
        # Keep >= 2 grid steps so the "parallel" axis spans both v7x TCs.
        if rows > 2 * sublane:
            tm = min(tm, _round_up(pl.cdiv(rows, 2), sublane))

    grid = (pl.cdiv(rows, tm),)

    out = pl.pallas_call(
        _layer_scale_kernel,
        out_shape=jax.ShapeDtypeStruct((rows, Dp), x.dtype),
        grid_spec=pltpu.PrefetchScalarGridSpec(
            num_scalar_prefetch=0,
            grid=grid,
            in_specs=[
                pl.BlockSpec((tm, Dp), lambda i: (i, 0)),  # x rows: tiled
                pl.BlockSpec((1, Dp), lambda i: (0, 0)),   # gamma: resident
            ],
            out_specs=pl.BlockSpec((tm, Dp), lambda i: (i, 0)),
        ),
        compiler_params=pltpu.CompilerParams(
            dimension_semantics=("parallel",),
            vmem_limit_bytes=vmem_limit,
        ),
        cost_estimate=pl.CostEstimate(
            flops=rows * Dp,
            transcendentals=0,
            bytes_accessed=2 * rows * Dp * itemsize + Dp * 4,
        ),
        input_output_aliases=({0: 0} if donate_x else {}),
    )(x2, g2)

    return out.reshape(orig_shape)


if __name__ == "__main__":
    key = jax.random.PRNGKey(0)
    kx, kg, k2, k3, k4 = jax.random.split(key, 5)

    # (B, N, D) token layout like DINOv2 blocks; small D=32 exercises the
    # lane-fold path (no padding, lane-dense output).
    B, N, D = 2, 8, 32
    x = jax.random.normal(kx, (B, N, D), dtype=jnp.float32)
    gamma = jnp.ones((D,), jnp.float32) + 0.01 * jax.random.normal(
        kg, (D,), jnp.float32
    )
    out = jax.block_until_ready(layer_scale(x, gamma))
    assert out.shape == x.shape and out.dtype == x.dtype
    assert jnp.allclose(out, x * gamma, atol=1e-6, rtol=1e-6)

    # Lane-dense D (D % 128 == 0) with a multi-step row grid.
    B2, N2, D2 = 2, 16, 128
    x_big = jax.random.normal(k2, (B2, N2, D2), dtype=jnp.float32)
    g_big = jnp.ones((D2,), jnp.float32) + 0.01 * jax.random.normal(
        k3, (D2,), jnp.float32
    )
    out_big = jax.block_until_ready(layer_scale(x_big, g_big))
    assert jnp.allclose(out_big, x_big * g_big, atol=1e-6, rtol=1e-6)

    # Mixed precision: bf16 activations, f32 gamma (multiply done in f32).
    x_bf16 = x_big.astype(jnp.bfloat16)
    out_bf16 = jax.block_until_ready(layer_scale(x_bf16, g_big))
    ref_bf16 = (x_bf16.astype(jnp.float32) * g_big).astype(jnp.bfloat16)
    assert out_bf16.dtype == jnp.bfloat16
    assert jnp.allclose(
        out_bf16.astype(jnp.float32), ref_bf16.astype(jnp.float32),
        atol=1e-2, rtol=1e-2,
    )

    # Ragged D (neither a multiple nor a divisor of 128): full-D block path.
    D3 = 40
    x_odd = jax.random.normal(k4, (2, 8, D3), dtype=jnp.float32)
    g_odd = jnp.ones((D3,), jnp.float32)
    out_odd = jax.block_until_ready(layer_scale(x_odd, g_odd))
    assert jnp.allclose(out_odd, x_odd * g_odd, atol=1e-6, rtol=1e-6)

    print("KERNEL_OK")
</pallas_src>

<mosaic_0001>
module attributes {stable_mosaic.version = 11 : i64} {
  func.func @_layer_scale_kernel(%arg0: i32, %arg1: memref<4x128xf32, #tpu.memory_space<vmem>>, %arg2: memref<1x128xf32, #tpu.memory_space<vmem>>, %arg3: memref<4x128xf32, #tpu.memory_space<vmem>>) attributes {dimension_semantics = [#tpu.dimension_semantics<parallel>], iteration_bounds = array<i64: 1>, scalar_prefetch = 0 : i64, scratch_operands = 0 : i64, tpu.core_type = #tpu.core_type<tc>, window_params = [{transform_indices = @transform_0, window_bounds = array<i64: 4, 128>}, {pipeline_mode = #tpu.pipeline_mode<synchronous>, transform_indices = @transform_1, window_bounds = array<i64: 1, 128>}, {transform_indices = @transform_2, window_bounds = array<i64: 4, 128>}]} {
    %c0 = arith.constant 0 : index
    %c0_0 = arith.constant 0 : index
    %0 = vector.load %arg1[%c0, %c0_0] : memref<4x128xf32, #tpu.memory_space<vmem>>, vector<4x128xf32>
    %c0_1 = arith.constant 0 : index
    %c0_2 = arith.constant 0 : index
    %1 = vector.load %arg2[%c0_1, %c0_2] : memref<1x128xf32, #tpu.memory_space<vmem>>, vector<1x128xf32>
    %2 = vector.broadcast %1 : vector<1x128xf32> to vector<4x128xf32>
    %3 = arith.mulf %0, %2 : vector<4x128xf32>
    %c0_3 = arith.constant 0 : index
    %c0_4 = arith.constant 0 : index
    %4 = vector.load %arg3[%c0_3, %c0_4] : memref<4x128xf32, #tpu.memory_space<vmem>>, vector<4x128xf32>
    tpu.vector_store %arg3[%c0_3, %c0_4], %3 {strides = array<i32>} : memref<4x128xf32, #tpu.memory_space<vmem>>, vector<4x128xf32>,
    return
  }
  func.func @transform_0(%arg0: i32) -> (i32, i32) {
    %c0_i32 = arith.constant 0 : i32
    %c0_i32_0 = arith.constant 0 : i32
    return %arg0, %c0_i32 : i32, i32
  }
  func.func @transform_1(%arg0: i32) -> (i32, i32) {
    %c0_i32 = arith.constant 0 : i32
    %c0_i32_0 = arith.constant 0 : i32
    %c0_i32_1 = arith.constant 0 : i32
    return %c0_i32, %c0_i32_0 : i32, i32
  }
  func.func @transform_2(%arg0: i32) -> (i32, i32) {
    %c0_i32 = arith.constant 0 : i32
    %c0_i32_0 = arith.constant 0 : i32
    return %arg0, %c0_i32 : i32, i32
  }
}

</mosaic_0001>

<bundles_post_ra>
// kernel: tpu_custom_call.1
= control target key start
LH: loop header
LB: loop body
LE: loop exit
PB: predicated region body
PF: predicated region fallthrough
CT: control target
= control target key end

     0   :  { %7 = vsyncpa [#allocation3], 0  ;;  %s144_s0 = inlined_call_operand.hbm [shape: f32[4,128], index: 0, kind: input, shape index: {}]   ;;  %s145_s1 = inlined_call_operand.vmem [shape: f32[1,128], index: 1, kind: input, shape index: {}]   ;;  %s146_s2 = inlined_call_operand.hbm [shape: f32[4,128], index: 2, kind: output, shape index: {}]  }
   0x1   :  { %8 = vsyncpa [#allocation4], 0  ;;  %s100_s9 = smov [#allocation2]   ;;  %s52_s13 = scalar_lea.hbm %s144_s0, 64 }
   0x2   :  { %s15_s10 = sshll.u32 %s100_s9, 4  ;;  %p53_p0 = scmp.ne.s32.totalorder %s144_s0, %s52_s13  ;;  %s16_s10 = int_to_ptr.vmem [resolvable:$true] %s15_s10 }
   0x3   :  { %p56_p1 = scmp.lt.u32.totalorder %s52_s13, %s144_s0 }
   0x5   :  { %p58_p2 = pnand %p56_p1, %p53_p0 }
   0x7   :  { %61 = shalt.err (!%p58_p2)
}
   0x8   :  { %s62_s18 = scalar_lea.vmem %s16_s10, 64  ;;  %p67_p4 = scmp.lt.s32.totalorder %s16_s10, %s16_s10 }
   0x9   :  { %p63_p3 = scmp.ne.s32.totalorder %s16_s10, %s62_s18  ;;  %p68_p5 = scmp.lt.s32.totalorder %s62_s18, %s62_s18 }
   0xb   :  { %p69_p6 = por %p68_p5, %p67_p4 }
   0xd   :  { %p70_p7 = pnand %p69_p6, %p63_p3 }
   0xf   :  { %73 = shalt.err (!%p70_p7)
}
  0x10   :  { %18 = dma.hbm_to_vmem [thread:$0]  %s144_s0, 64, %s16_s10, [#allocation3]  }
  0x11   :  { %96 = dma.done.wait [#allocation3], 64  }
  0x12   :  { %97 = vsyncadd [#allocation3], 4294967232  ;;  %s101_s21 = smov [#allocation5]   ;;  %v24_v0 = vld [vmem:[#allocation2] sm:$0xf] }
  0x13   :  { %s40_s22 = sshll.u32 %s101_s21, 4  ;;  %v49_v1 = vld [vmem:[%s145_s1] ss:$0 sm:$0xff]  ;;  %s41_s22 = int_to_ptr.vmem [resolvable:$true] %s40_s22 }
  0x14   :  { %v32_v2 = vmul.f32 %v49_v1, %v24_v0  ;;  %s74_s25 = scalar_lea.vmem %s41_s22, 64  ;;  %p79_p9 = scmp.lt.s32.totalorder %s41_s22, %s41_s22 }
  0x15   :  { %p75_p8 = scmp.ne.s32.totalorder %s41_s22, %s74_s25  ;;  %p80_p10 = scmp.lt.s32.totalorder %s74_s25, %s74_s25 }
  0x16   :  { %33 = vst [vmem:[#allocation5] sm:$0xf] %v32_v2 }
  0x17   :  { %p81_p11 = por %p80_p10, %p79_p9 }
  0x19   :  { %p82_p12 = pnand %p81_p11, %p75_p8 }
  0x1b   :  { %85 = shalt.err (!%p82_p12)
}
  0x1c   :  { %s86_s27 = scalar_lea.hbm %s146_s2, 64 }
  0x1d   :  { %p87_p13 = scmp.ne.s32.totalorder %s146_s2, %s86_s27  ;;  %p90_p0 = scmp.lt.u32.totalorder %s86_s27, %s146_s2 }
  0x1f   :  { %p92_p1 = pnand %p90_p0, %p87_p13 }
  0x21   :  { %95 = shalt.err (!%p92_p1)
}
  0x22   :  { %43 = dma.vmem_to_hbm [thread:$0]  %s41_s22, 64, %s146_s2, [#allocation4]  }
  0x23   :  { %98 = dma.done.wait [#allocation4], 64  }
  0x24   :  { %99 = vsyncadd [#allocation4], 4294967232 }
  0x25   :  { %47 = vsyncpa [#allocation3], 1 }
  0x26   :  { %48 = vsyncpa [#allocation4], 1 }

</bundles_post_ra>
